<compile_context>
chip_gen: v6e
topology: v6e:2x2x1
jax: 0.10.0
libtpu: 0.0.40
codegen_flags: <defaults>
</compile_context>

<pallas_src>
import functools

import jax
import jax.numpy as jnp
from jax.experimental import pallas as pl
from jax.experimental.pallas import tpu as pltpu

HIDDEN = 128
LANE = 128
SUBLANE = 8
NEG_BIG = -1e30  # masks padded action columns before softmax (exp -> 0)


def _round_up(x, m):
    return (x + m - 1) // m * m


def actor_kernel(x_ref, w1_ref, b1_ref, w2_ref, b2_ref, w3_ref, b3_ref, o_ref,
                 *, n_actions):
    x = x_ref[...]  # (TB, S), already the matmul dtype (f32 or bf16)

    # fc1 + ReLU (MXU accumulates in f32, elementwise in f32)
    h1 = jnp.dot(x, w1_ref[...], preferred_element_type=jnp.float32) + b1_ref[...]
    h1 = jnp.maximum(h1, 0.0)

    # fc2 + ReLU
    h2 = jnp.dot(h1.astype(w2_ref.dtype), w2_ref[...],
                 preferred_element_type=jnp.float32) + b2_ref[...]
    h2 = jnp.maximum(h2, 0.0)

    # fc3 over the lane-dense padded slab (pad columns have NEG_BIG bias)
    logits = jnp.dot(h2.astype(w3_ref.dtype), w3_ref[...],
                     preferred_element_type=jnp.float32) + b3_ref[...]

    # numerically stable softmax; exact division (off the critical path)
    m = jnp.max(logits, axis=-1, keepdims=True)
    e = jnp.exp(logits - m)
    denom = jnp.sum(e, axis=-1, keepdims=True)
    probs = e / denom

    # store only the real action columns (unpadded HBM writeback)
    o_ref[...] = probs[:, :n_actions].astype(o_ref.dtype)


def prepare_params(params, *, use_bf16_matmul=True):
    """One-time parameter prep (pad w3/b3 to a lane-dense slab, cast matmul operands).

    params = (w1, b1, w2, b2, w3, b3), weights as (in_features, out_features).
    """
    w1, b1, w2, b2, w3, b3 = params
    S = w1.shape[0]
    A = w3.shape[1]
    A_pad = _round_up(max(A, 1), LANE)

    mm_dtype = jnp.bfloat16 if use_bf16_matmul else jnp.float32

    w1p = w1.astype(mm_dtype)                       # (S, 128), no S padding
    w2p = w2.astype(mm_dtype)                       # (128, 128)
    w3p = jnp.zeros((HIDDEN, A_pad), mm_dtype).at[:, :A].set(w3.astype(mm_dtype))
    b1p = b1.reshape(1, HIDDEN).astype(jnp.float32)
    b2p = b2.reshape(1, HIDDEN).astype(jnp.float32)
    b3p = jnp.full((1, A_pad), NEG_BIG, jnp.float32).at[0, :A].set(
        b3.reshape(-1).astype(jnp.float32))

    return {
        "w1": w1p, "b1": b1p, "w2": w2p, "b2": b2p, "w3": w3p, "b3": b3p,
        "state_size": S, "action_size": A, "mm_dtype": mm_dtype,
    }


def _choose_batch_tile(batch, block_batch):
    """Batch tile: multiple of 8, <= block_batch, even grid length when >1 tile."""
    b8 = _round_up(max(batch, 1), SUBLANE)
    if b8 <= block_batch:
        return b8                      # single tile covers the whole batch
    n_tiles = -(-b8 // block_batch)    # ceil
    if n_tiles % 2:                    # even grid -> both v7x TensorCores get work
        n_tiles += 1
    return _round_up(-(-b8 // n_tiles), SUBLANE)


def actor_forward(x, prepared, *, block_batch=1024, out_dtype=jnp.float32):
    """x: (B, state_size); prepared: output of prepare_params()."""
    w1p, b1p = prepared["w1"], prepared["b1"]
    w2p, b2p = prepared["w2"], prepared["b2"]
    w3p, b3p = prepared["w3"], prepared["b3"]
    S = prepared["state_size"]
    A = prepared["action_size"]
    A_pad = w3p.shape[1]
    mm_dtype = prepared["mm_dtype"]

    B = x.shape[0]
    assert x.shape[1] == S

    TB = _choose_batch_tile(B, block_batch)
    B_pad = _round_up(B, TB)

    # Ideally x already arrives in mm_dtype (avoids a wrapper HBM pass).
    xp = x if x.dtype == mm_dtype else x.astype(mm_dtype)
    if B_pad != B:
        xp = jnp.pad(xp, ((0, B_pad - B), (0, 0)))   # batch pad only, single op

    grid = (B_pad // TB,)
    kernel = functools.partial(actor_kernel, n_actions=A)

    itemsize = jnp.dtype(mm_dtype).itemsize
    out_itemsize = jnp.dtype(out_dtype).itemsize
    weight_elems = S * HIDDEN + HIDDEN * HIDDEN + HIDDEN * A_pad

    cost = pl.CostEstimate(
        flops=2 * B_pad * weight_elems,
        transcendentals=B_pad * A_pad,               # exp over the padded slab
        bytes_accessed=(B_pad * S * itemsize         # x reads (unpadded S)
                        + weight_elems * itemsize    # weights, read once
                        + (2 * HIDDEN + A_pad) * 4   # biases
                        + B_pad * A * out_itemsize), # unpadded output writeback
    )

    # Rough per-step VMEM footprint; only raise the scoped limit when actually needed
    # (keeps headroom on v7x's 64 MiB VMEM / 32 MiB default scoped limit).
    vmem_estimate = (
        2 * TB * S * itemsize                         # x double buffer
        + 2 * TB * A * out_itemsize                   # out double buffer
        + 2 * weight_elems * itemsize                 # weights (conservative x2)
        + 6 * TB * HIDDEN * 4                         # f32 intermediates
    )
    vmem_limit = None
    if vmem_estimate > 24 * 1024 * 1024:
        vmem_limit = min(int(vmem_estimate * 3 // 2), 120 * 1024 * 1024)

    # TODO(synk): if profiling shows exposed x DMA after raising TB, add
    #             pipeline_mode=pl.Buffered(3) to the x BlockSpec.
    out = pl.pallas_call(
        kernel,
        out_shape=jax.ShapeDtypeStruct((B_pad, A), out_dtype),
        grid=grid,
        in_specs=[
            pl.BlockSpec((TB, S), lambda i: (i, 0)),          # x: tiled over batch, unpadded S
            pl.BlockSpec((S, HIDDEN), lambda i: (0, 0)),      # w1: VMEM-resident
            pl.BlockSpec((1, HIDDEN), lambda i: (0, 0)),      # b1
            pl.BlockSpec((HIDDEN, HIDDEN), lambda i: (0, 0)), # w2
            pl.BlockSpec((1, HIDDEN), lambda i: (0, 0)),      # b2
            pl.BlockSpec((HIDDEN, A_pad), lambda i: (0, 0)),  # w3 (lane-padded cols)
            pl.BlockSpec((1, A_pad), lambda i: (0, 0)),       # b3 (NEG_BIG pad cols)
        ],
        out_specs=pl.BlockSpec((TB, A), lambda i: (i, 0)),    # unpadded action dim
        compiler_params=pltpu.CompilerParams(
            dimension_semantics=("parallel",),                 # batch across 2 TCs on v7x
            vmem_limit_bytes=vmem_limit),
        cost_estimate=cost,
    )(xp, w1p, b1p, w2p, b2p, w3p, b3p)

    if B_pad != B:
        out = out[:B]
    return out


def init_params(key, state_size, action_size):
    """Deterministic init mimicking nn.Linear's default uniform(-1/sqrt(fan_in), ...)."""
    def linear(key, fan_in, fan_out):
        kw, kb = jax.random.split(key)
        bound = 1.0 / jnp.sqrt(jnp.float32(fan_in))
        w = jax.random.uniform(kw, (fan_in, fan_out), jnp.float32, -bound, bound)
        b = jax.random.uniform(kb, (1, fan_out), jnp.float32, -bound, bound)
        return w, b

    k1, k2, k3 = jax.random.split(key, 3)
    w1, b1 = linear(k1, state_size, HIDDEN)
    w2, b2 = linear(k2, HIDDEN, HIDDEN)
    w3, b3 = linear(k3, HIDDEN, action_size)
    return (w1, b1, w2, b2, w3, b3)


if __name__ == "__main__":
    # Small shapes consistent with the module: Actor(state_size, action_size, seed)
    batch = 8
    state_size = 16
    action_size = 8

    key = jax.random.PRNGKey(0)
    kx, kp, kx2 = jax.random.split(key, 3)
    x = jax.random.normal(kx, (batch, state_size), jnp.float32)
    params = init_params(kp, state_size, action_size)

    w1, b1, w2, b2, w3, b3 = params

    def ref_fn(xs):
        h1 = jnp.maximum(xs @ w1 + b1, 0.0)
        h2 = jnp.maximum(h1 @ w2 + b2, 0.0)
        return jax.nn.softmax(h2 @ w3 + b3, axis=-1)

    # 1) f32-matmul path: tight numeric check against the pure-JAX reference.
    prep_f32 = prepare_params(params, use_bf16_matmul=False)
    out = jax.block_until_ready(actor_forward(x, prep_f32))
    ref = ref_fn(x)
    assert out.shape == (batch, action_size)
    assert jnp.allclose(out, ref, atol=1e-5, rtol=1e-5)
    assert jnp.allclose(jnp.sum(out, axis=-1), 1.0, atol=1e-5)

    # 2) Default bf16-matmul path (v6e/v7x) with an odd batch that exercises
    #    batch padding, tile selection and a multi-tile (even-length) grid.
    big_batch = 2500
    x_big = jax.random.normal(kx2, (big_batch, state_size), jnp.float32)
    prep_bf16 = prepare_params(params, use_bf16_matmul=True)
    out_big = jax.block_until_ready(actor_forward(x_big, prep_bf16, block_batch=1024))
    ref_big = ref_fn(x_big)
    assert out_big.shape == (big_batch, action_size)
    assert jnp.allclose(out_big, ref_big, atol=5e-2, rtol=5e-2)   # bf16 operands
    assert jnp.allclose(jnp.sum(out_big, axis=-1), 1.0, atol=1e-3)

    print("KERNEL_OK")
</pallas_src>

<mosaic_0001>
module attributes {stable_mosaic.version = 11 : i64} {
  func.func @actor_kernel(%arg0: i32, %arg1: memref<8x16xf32, #tpu.memory_space<vmem>>, %arg2: memref<16x128xf32, #tpu.memory_space<vmem>>, %arg3: memref<1x128xf32, #tpu.memory_space<vmem>>, %arg4: memref<128x128xf32, #tpu.memory_space<vmem>>, %arg5: memref<1x128xf32, #tpu.memory_space<vmem>>, %arg6: memref<128x128xf32, #tpu.memory_space<vmem>>, %arg7: memref<1x128xf32, #tpu.memory_space<vmem>>, %arg8: memref<8x8xf32, #tpu.memory_space<vmem>>) attributes {dimension_semantics = [#tpu.dimension_semantics<parallel>], iteration_bounds = array<i64: 1>, scalar_prefetch = 0 : i64, scratch_operands = 0 : i64, tpu.core_type = #tpu.core_type<tc>, window_params = [{transform_indices = @transform_0, window_bounds = array<i64: 8, 16>}, {pipeline_mode = #tpu.pipeline_mode<synchronous>, transform_indices = @transform_1, window_bounds = array<i64: 16, 128>}, {pipeline_mode = #tpu.pipeline_mode<synchronous>, transform_indices = @transform_2, window_bounds = array<i64: 1, 128>}, {pipeline_mode = #tpu.pipeline_mode<synchronous>, transform_indices = @transform_3, window_bounds = array<i64: 128, 128>}, {pipeline_mode = #tpu.pipeline_mode<synchronous>, transform_indices = @transform_4, window_bounds = array<i64: 1, 128>}, {pipeline_mode = #tpu.pipeline_mode<synchronous>, transform_indices = @transform_5, window_bounds = array<i64: 128, 128>}, {pipeline_mode = #tpu.pipeline_mode<synchronous>, transform_indices = @transform_6, window_bounds = array<i64: 1, 128>}, {transform_indices = @transform_7, window_bounds = array<i64: 8, 8>}]} {
    %c0 = arith.constant 0 : index
    %c0_0 = arith.constant 0 : index
    %0 = vector.load %arg1[%c0, %c0_0] : memref<8x16xf32, #tpu.memory_space<vmem>>, vector<8x16xf32>
    %c0_1 = arith.constant 0 : index
    %c0_2 = arith.constant 0 : index
    %1 = vector.load %arg2[%c0_1, %c0_2] : memref<16x128xf32, #tpu.memory_space<vmem>>, vector<16x128xf32>
    %cst = arith.constant dense<0.000000e+00> : vector<8x128xf32>
    %2 = tpu.matmul %0, %1, %cst {dimension_numbers = #tpu.dot_dimension_numbers<[1], [0], [0], [1], [0, 0, 1, 1], [], []>} : vector<8x16xf32>, vector<16x128xf32>, vector<8x128xf32> -> vector<8x128xf32>
    %c0_3 = arith.constant 0 : index
    %c0_4 = arith.constant 0 : index
    %3 = vector.load %arg3[%c0_3, %c0_4] : memref<1x128xf32, #tpu.memory_space<vmem>>, vector<1x128xf32>
    %4 = vector.broadcast %3 : vector<1x128xf32> to vector<8x128xf32>
    %5 = arith.addf %2, %4 : vector<8x128xf32>
    %cst_5 = arith.constant 0.000000e+00 : f32
    %6 = vector.broadcast %cst_5 : f32 to vector<8x128xf32>
    %7 = arith.maximumf %5, %6 : vector<8x128xf32>
    %c0_6 = arith.constant 0 : index
    %c0_7 = arith.constant 0 : index
    %8 = vector.load %arg4[%c0_6, %c0_7] : memref<128x128xf32, #tpu.memory_space<vmem>>, vector<128x128xf32>
    %cst_8 = arith.constant dense<0.000000e+00> : vector<8x128xf32>
    %9 = tpu.matmul %7, %8, %cst_8 {dimension_numbers = #tpu.dot_dimension_numbers<[1], [0], [0], [1], [0, 0, 1, 1], [], []>} : vector<8x128xf32>, vector<128x128xf32>, vector<8x128xf32> -> vector<8x128xf32>
    %c0_9 = arith.constant 0 : index
    %c0_10 = arith.constant 0 : index
    %10 = vector.load %arg5[%c0_9, %c0_10] : memref<1x128xf32, #tpu.memory_space<vmem>>, vector<1x128xf32>
    %11 = vector.broadcast %10 : vector<1x128xf32> to vector<8x128xf32>
    %12 = arith.addf %9, %11 : vector<8x128xf32>
    %cst_11 = arith.constant 0.000000e+00 : f32
    %13 = vector.broadcast %cst_11 : f32 to vector<8x128xf32>
    %14 = arith.maximumf %12, %13 : vector<8x128xf32>
    %c0_12 = arith.constant 0 : index
    %c0_13 = arith.constant 0 : index
    %15 = vector.load %arg6[%c0_12, %c0_13] : memref<128x128xf32, #tpu.memory_space<vmem>>, vector<128x128xf32>
    %cst_14 = arith.constant dense<0.000000e+00> : vector<8x128xf32>
    %16 = tpu.matmul %14, %15, %cst_14 {dimension_numbers = #tpu.dot_dimension_numbers<[1], [0], [0], [1], [0, 0, 1, 1], [], []>} : vector<8x128xf32>, vector<128x128xf32>, vector<8x128xf32> -> vector<8x128xf32>
    %c0_15 = arith.constant 0 : index
    %c0_16 = arith.constant 0 : index
    %17 = vector.load %arg7[%c0_15, %c0_16] : memref<1x128xf32, #tpu.memory_space<vmem>>, vector<1x128xf32>
    %18 = vector.broadcast %17 : vector<1x128xf32> to vector<8x128xf32>
    %19 = arith.addf %16, %18 : vector<8x128xf32>
    %cst_17 = arith.constant dense<0xFF800000> : vector<8xf32>
    %20 = vector.multi_reduction <maximumf>, %19, %cst_17 [1] : vector<8x128xf32> to vector<8xf32>
    %21 = vector.shape_cast %20 : vector<8xf32> to vector<8x1xf32>
    %22 = vector.broadcast %21 : vector<8x1xf32> to vector<8x128xf32>
    %23 = arith.subf %19, %22 : vector<8x128xf32>
    %24 = math.exp %23 : vector<8x128xf32>
    %cst_18 = arith.constant dense<0.000000e+00> : vector<8xf32>
    %25 = vector.multi_reduction <add>, %24, %cst_18 [1] : vector<8x128xf32> to vector<8xf32>
    %26 = vector.shape_cast %25 : vector<8xf32> to vector<8x1xf32>
    %27 = vector.broadcast %26 : vector<8x1xf32> to vector<8x128xf32>
    %28 = arith.divf %24, %27 : vector<8x128xf32>
    %29 = vector.extract_strided_slice %28 {offsets = [0, 0], sizes = [8, 8], strides = [1, 1]} : vector<8x128xf32> to vector<8x8xf32>
    %c0_19 = arith.constant 0 : index
    %c0_20 = arith.constant 0 : index
    %30 = vector.load %arg8[%c0_19, %c0_20] : memref<8x8xf32, #tpu.memory_space<vmem>>, vector<8x8xf32>
    tpu.vector_store %arg8[%c0_19, %c0_20], %29 {strides = array<i32>} : memref<8x8xf32, #tpu.memory_space<vmem>>, vector<8x8xf32>,
    return
  }
  func.func @transform_0(%arg0: i32) -> (i32, i32) {
    %c0_i32 = arith.constant 0 : i32
    %c0_i32_0 = arith.constant 0 : i32
    return %arg0, %c0_i32 : i32, i32
  }
  func.func @transform_1(%arg0: i32) -> (i32, i32) {
    %c0_i32 = arith.constant 0 : i32
    %c0_i32_0 = arith.constant 0 : i32
    %c0_i32_1 = arith.constant 0 : i32
    return %c0_i32, %c0_i32_0 : i32, i32
  }
  func.func @transform_2(%arg0: i32) -> (i32, i32) {
    %c0_i32 = arith.constant 0 : i32
    %c0_i32_0 = arith.constant 0 : i32
    %c0_i32_1 = arith.constant 0 : i32
    return %c0_i32, %c0_i32_0 : i32, i32
  }
  func.func @transform_3(%arg0: i32) -> (i32, i32) {
    %c0_i32 = arith.constant 0 : i32
    %c0_i32_0 = arith.constant 0 : i32
    %c0_i32_1 = arith.constant 0 : i32
    return %c0_i32, %c0_i32_0 : i32, i32
  }
  func.func @transform_4(%arg0: i32) -> (i32, i32) {
    %c0_i32 = arith.constant 0 : i32
    %c0_i32_0 = arith.constant 0 : i32
    %c0_i32_1 = arith.constant 0 : i32
    return %c0_i32, %c0_i32_0 : i32, i32
  }
  func.func @transform_5(%arg0: i32) -> (i32, i32) {
    %c0_i32 = arith.constant 0 : i32
    %c0_i32_0 = arith.constant 0 : i32
    %c0_i32_1 = arith.constant 0 : i32
    return %c0_i32, %c0_i32_0 : i32, i32
  }
  func.func @transform_6(%arg0: i32) -> (i32, i32) {
    %c0_i32 = arith.constant 0 : i32
    %c0_i32_0 = arith.constant 0 : i32
    %c0_i32_1 = arith.constant 0 : i32
    return %c0_i32, %c0_i32_0 : i32, i32
  }
  func.func @transform_7(%arg0: i32) -> (i32, i32) {
    %c0_i32 = arith.constant 0 : i32
    %c0_i32_0 = arith.constant 0 : i32
    return %arg0, %c0_i32 : i32, i32
  }
}

</mosaic_0001>

<bundles_post_ra>
// kernel: tpu_custom_call.1
= control target key start
LH: loop header
LB: loop body
LE: loop exit
PB: predicated region body
PF: predicated region fallthrough
CT: control target
= control target key end

     0   :  { %12 = vsyncpa [#allocation3], 0  ;;  %s741_s0 = inlined_call_operand.hbm [shape: f32[8,16], index: 0, kind: input, shape index: {}]   ;;  %s742_s1 = inlined_call_operand.hbm [shape: f32[16,128], index: 1, kind: input, shape index: {}]   ;;  %s743_s2 = inlined_call_operand.vmem [shape: f32[1,128], index: 2, kind: input, shape index: {}]   ;;  %s744_s3 = inlined_call_operand.hbm [shape: f32[128,128], index: 3, kind: input, shape index: {}]   ;;  %s745_s4 = inlined_call_operand.vmem [shape: f32[1,128], index: 4, kind: input, shape index: {}]   ;;  %s746_s5 = inlined_call_operand.hbm [shape: f32[128,128], index: 5, kind: input, shape index: {}]   ;;  %s747_s6 = inlined_call_operand.vmem [shape: f32[1,128], index: 6, kind: input, shape index: {}]   ;;  %s748_s7 = inlined_call_operand.hbm [shape: f32[8,8], index: 7, kind: output, shape index: {}]  }
   0x1   :  { %13 = vsyncpa [#allocation6], 0 }
   0x2   :  { %14 = vsyncpa [#allocation9], 0 }
   0x3   :  { %15 = vsyncpa [#allocation4], 0  ;;  %s619_s24 = smov [#allocation5]  }
   0x4   :  { %s31_s25 = sshll.u32 %s619_s24, 4  ;;  %s32_s25 = int_to_ptr.vmem [resolvable:$true] %s31_s25 }
   0x5   :  { %s519_s26 = scalar_lea.vmem %s32_s25, 256  ;;  %p524_p1 = scmp.lt.s32.totalorder %s32_s25, %s32_s25 }
   0x6   :  { %p520_p0 = scmp.ne.s32.totalorder %s32_s25, %s519_s26  ;;  %p525_p2 = scmp.lt.s32.totalorder %s519_s26, %s519_s26 }
   0x8   :  { %p526_p3 = por %p525_p2, %p524_p1 }
   0xa   :  { %p527_p4 = pnand %p526_p3, %p520_p0 }
   0xc   :  { %530 = shalt.err (!%p527_p4)
}
   0xd   :  { %s620_s27 = smov 128   ;;  %s621_s28 = smov 8  }
   0xe   :  { %37 = dma.hbm_to_vmem [thread:$0]  %s742_s1, 256, %s32_s25, [#allocation6], %s620_s27, %s620_s27, %s621_s28  }
   0xf   :  { %s622_s8 = smov [#allocation2]   ;;  %s623_s10 = smov [#allocation7]  }
  0x10   :  { %s22_s9 = sshll.u32 %s622_s8, 4  ;;  %s45_s11 = sshll.u32 %s623_s10, 4  ;;  %s23_s9 = int_to_ptr.vmem [resolvable:$true] %s22_s9  ;;  %s46_s11 = int_to_ptr.vmem [resolvable:$true] %s45_s11 }
  0x11   :  { %s539_s12 = scalar_lea.vmem %s23_s9, 128  ;;  %p544_p6 = scmp.lt.s32.totalorder %s23_s9, %s23_s9 }
  0x12   :  { %p540_p5 = scmp.ne.s32.totalorder %s23_s9, %s539_s12  ;;  %p545_p7 = scmp.lt.s32.totalorder %s539_s12, %s539_s12 }
  0x14   :  { %p546_p8 = por %p545_p7, %p544_p6 }
  0x16   :  { %p547_p9 = pnand %p546_p8, %p540_p5 }
  0x18   :  { %550 = shalt.err (!%p547_p9)
}
  0x19   :  { %25 = dma.hbm_to_vmem [thread:$0]  %s741_s0, 128, %s23_s9, [#allocation3]  }
  0x1a   :  { %s559_s15 = scalar_lea.vmem %s46_s11, 2048  ;;  %p564_p11 = scmp.lt.s32.totalorder %s46_s11, %s46_s11 }
  0x1b   :  { %p560_p10 = scmp.ne.s32.totalorder %s46_s11, %s559_s15  ;;  %p565_p12 = scmp.lt.s32.totalorder %s559_s15, %s559_s15 }
  0x1d   :  { %p566_p13 = por %p565_p12, %p564_p11 }
  0x1f   :  { %p567_p0 = pnand %p566_p13, %p560_p10 }
  0x21   :  { %570 = shalt.err (!%p567_p0)
}
  0x22   :  { %51 = dma.hbm_to_vmem [thread:$0]  %s744_s3, 2048, %s46_s11, [#allocation6], %s620_s27, %s620_s27, %s621_s28  }
  0x23   :  { %s624_s17 = smov [#allocation8]  }
  0x24   :  { %s59_s18 = sshll.u32 %s624_s17, 4  ;;  %s60_s18 = int_to_ptr.vmem [resolvable:$true] %s59_s18 }
  0x25   :  { %s579_s19 = scalar_lea.vmem %s60_s18, 2048  ;;  %p584_p2 = scmp.lt.s32.totalorder %s60_s18, %s60_s18 }
  0x26   :  { %p580_p1 = scmp.ne.s32.totalorder %s60_s18, %s579_s19  ;;  %p585_p3 = scmp.lt.s32.totalorder %s579_s19, %s579_s19 }
  0x28   :  { %p586_p4 = por %p585_p3, %p584_p2 }
  0x2a   :  { %p587_p5 = pnand %p586_p4, %p580_p1 }
  0x2c   :  { %590 = shalt.err (!%p587_p5)
}
  0x2d   :  { %65 = dma.hbm_to_vmem [thread:$0]  %s746_s5, 2048, %s60_s18, [#allocation9], %s620_s27, %s620_s27, %s621_s28  }
  0x2e   :  { %611 = dma.done.wait [#allocation3], 128  }
  0x2f   :  { %612 = vsyncadd [#allocation3], 4294967168 }
  0x30   :  { %613 = dma.done.wait [#allocation6], 2304  }
  0x31   :  { %614 = vsyncadd [#allocation6], 4294964992 }
  0x32   :  { %615 = dma.done.wait [#allocation9], 2048  }
  0x33   :  { %616 = vsyncadd [#allocation9], 4294965248  ;;  %v625_v0 = vmov 0.0   ;;  %vm626_vm0 = vmmov 0   ;;  %v82_v1 = vld [vmem:[#allocation5 + $0x8] sm:$0xff]  ;;  %v81_v2 = vld [vmem:[#allocation5] sm:$0xff] }
  0x34   :  { %421 = vmatprep.subr.mxu0 %v625_v0  ;;  %425 = vmatprep.mubr.msk.f32.mxu0 %vm626_vm0, %v625_v0  ;;  %v80_v3 = vld [vmem:[#allocation2] sm:$0xff]  ;;  %vm90_vm1 = vcmask 130048   ;;  %v180_v4 = vld [vmem:[#allocation7 + $0x78] sm:$0xff]  ;;  %v179_v5 = vld [vmem:[#allocation7 + $0x70] sm:$0xff]  ;;  %vm361_vm2 = vcmask 64512  }
  0x35   :  { %428 = vmatprep.subr.mxu1 %v625_v0  ;;  %460 = vmatprep.mubr.msk.f32.mxu1 %vm626_vm0, %v625_v0  ;;  %v178_v6 = vld [vmem:[#allocation7 + $0x68] sm:$0xff]  ;;  %v177_v7 = vld [vmem:[#allocation7 + $0x60] sm:$0xff]  ;;  %v176_v8 = vld [vmem:[#allocation7 + $0x58] sm:$0xff] }
  0x36   :  { %422 = vmatpush3.msra.mxu0 %v82_v1  ;;  %429 = vmatpush3.msra.mxu1 %v180_v4  ;;  %v175_v9 = vld [vmem:[#allocation7 + $0x50] sm:$0xff]  ;;  %v174_v10 = vld [vmem:[#allocation7 + $0x48] sm:$0xff]  ;;  %v173_v11 = vld [vmem:[#allocation7 + $0x40] sm:$0xff] }
  0x37   :  { %423 = vmatprep.subr.mxu0 %v625_v0  ;;  %430 = vmatprep.subr.mxu1 %v625_v0  ;;  %v172_v12 = vld [vmem:[#allocation7 + $0x38] sm:$0xff]  ;;  %v171_v13 = vld [vmem:[#allocation7 + $0x30] sm:$0xff]  ;;  %v170_v14 = vld [vmem:[#allocation7 + $0x28] sm:$0xff] }
  0x38   :  { %424 = vmatpush3.msra.mxu0 %v81_v2  ;;  %431 = vmatpush3.msra.mxu1 %v179_v5  ;;  %v169_v15 = vld [vmem:[#allocation7 + $0x20] sm:$0xff]  ;;  %v168_v16 = vld [vmem:[#allocation7 + $0x18] sm:$0xff]  ;;  %v167_v17 = vld [vmem:[#allocation7 + $0x10] sm:$0xff] }
  0x39   :  { %426 = vmatmul.mubr.msk.f32.vlgmr.msra.gmra.mxu0 %vm90_vm1, %v80_v3  ;;  %432 = vmatprep.subr.mxu1 %v625_v0  ;;  %v166_v18 = vld [vmem:[#allocation7 + $0x8] sm:$0xff]  ;;  %v165_v19 = vld [vmem:[#allocation7] sm:$0xff]  ;;  %v274_v20 = vld [vmem:[#allocation8 + $0x78] sm:$0xff] }
  0x3a   :  { %463 = vmatprep.subr.mxu0 %v625_v0  ;;  %433 = vmatpush3.msra.mxu1 %v178_v6  ;;  %v273_v21 = vld [vmem:[#allocation8 + $0x70] sm:$0xff]  ;;  %v272_v22 = vld [vmem:[#allocation8 + $0x68] sm:$0xff]  ;;  %v271_v23 = vld [vmem:[#allocation8 + $0x60] sm:$0xff] }
  0x3b   :  { %495 = vmatprep.mubr.msk.f32.mxu0 %vm626_vm0, %v625_v0  ;;  %434 = vmatprep.subr.mxu1 %v625_v0  ;;  %v270_v24 = vld [vmem:[#allocation8 + $0x58] sm:$0xff]  ;;  %v269_v25 = vld [vmem:[#allocation8 + $0x50] sm:$0xff]  ;;  %v268_v26 = vld [vmem:[#allocation8 + $0x48] sm:$0xff] }
  0x3c   :  { %435 = vmatpush3.msra.mxu1 %v177_v7  ;;  %464 = vmatpush3.msra.mxu0 %v274_v20  ;;  %v267_v27 = vld [vmem:[#allocation8 + $0x40] sm:$0xff]  ;;  %v266_v28 = vld [vmem:[#allocation8 + $0x38] sm:$0xff]  ;;  %v265_v29 = vld [vmem:[#allocation8 + $0x30] sm:$0xff] }
  0x3d   :  { %436 = vmatprep.subr.mxu1 %v625_v0  ;;  %465 = vmatprep.subr.mxu0 %v625_v0  ;;  %v264_v30 = vld [vmem:[#allocation8 + $0x28] sm:$0xff]  ;;  %v263_v31 = vld [vmem:[#allocation8 + $0x20] sm:$0xff]  ;;  %v262_v32 = vld [vmem:[#allocation8 + $0x18] sm:$0xff] }
  0x3e   :  { %437 = vmatpush3.msra.mxu1 %v176_v8  ;;  %466 = vmatpush3.msra.mxu0 %v273_v21  ;;  %v380_v33 = vld [vmem:[%s743_s2] ss:$0 sm:$0xff]  ;;  %v261_v38 = vld [vmem:[#allocation8 + $0x10] sm:$0xff]  ;;  %v259_v40 = vld [vmem:[#allocation8] sm:$0xff] }
  0x3f   :  { %438 = vmatprep.subr.mxu1 %v625_v0  ;;  %467 = vmatprep.subr.mxu0 %v625_v0  ;;  %v260_v39 = vld [vmem:[#allocation8 + $0x8] sm:$0xff] }
  0x40   :  { %439 = vmatpush3.msra.mxu1 %v175_v9  ;;  %468 = vmatpush3.msra.mxu0 %v272_v22  ;;  %v382_v41 = vld [vmem:[%s745_s4] ss:$0 sm:$0xff]  ;;  %s627_s4 = smov [#allocation10]  }
  0x41   :  { %440 = vmatprep.subr.mxu1 %v625_v0  ;;  %469 = vmatprep.subr.mxu0 %v625_v0  ;;  %v383_v46 = vld [vmem:[%s747_s6] ss:$0 sm:$0xff]  ;;  %s369_s24 = sshll.u32 %s627_s4, 4  ;;  %s370_s24 = int_to_ptr.vmem [resolvable:$true] %s369_s24 }
  0x42   :  { %441 = vmatpush3.msra.mxu1 %v174_v10  ;;  %470 = vmatpush3.msra.mxu0 %v271_v23  ;;  %s591_s6 = scalar_lea.vmem %s370_s24, 128  ;;  %p596_p7 = scmp.lt.s32.totalorder %s370_s24, %s370_s24 }
  0x43   :  { %442 = vmatprep.subr.mxu1 %v625_v0  ;;  %471 = vmatprep.subr.mxu0 %v625_v0  ;;  %p592_p6 = scmp.ne.s32.totalorder %s370_s24, %s591_s6  ;;  %p597_p8 = scmp.lt.s32.totalorder %s591_s6, %s591_s6 }
  0x44   :  { %443 = vmatpush3.msra.mxu1 %v173_v11  ;;  %472 = vmatpush3.msra.mxu0 %v270_v24 }
  0x45   :  { %444 = vmatprep.subr.mxu1 %v625_v0  ;;  %473 = vmatprep.subr.mxu0 %v625_v0  ;;  %p598_p9 = por %p597_p8, %p596_p7 }
  0x46   :  { %445 = vmatpush3.msra.mxu1 %v172_v12  ;;  %474 = vmatpush3.msra.mxu0 %v269_v25 }
  0x47   :  { %446 = vmatprep.subr.mxu1 %v625_v0  ;;  %475 = vmatprep.subr.mxu0 %v625_v0  ;;  %p599_p10 = pnand %p598_p9, %p592_p6 }
  0x48   :  { %447 = vmatpush3.msra.mxu1 %v171_v13  ;;  %476 = vmatpush3.msra.mxu0 %v268_v26 }
  0x49   :  { %448 = vmatprep.subr.mxu1 %v625_v0  ;;  %477 = vmatprep.subr.mxu0 %v625_v0 }
  0x4a   :  { %449 = vmatpush3.msra.mxu1 %v170_v14  ;;  %478 = vmatpush3.msra.mxu0 %v267_v27 }
  0x4b   :  { %450 = vmatprep.subr.mxu1 %v625_v0  ;;  %479 = vmatprep.subr.mxu0 %v625_v0 }
  0x4c   :  { %451 = vmatpush3.msra.mxu1 %v169_v15  ;;  %480 = vmatpush3.msra.mxu0 %v266_v28 }
  0x4d   :  { %452 = vmatprep.subr.mxu1 %v625_v0  ;;  %481 = vmatprep.subr.mxu0 %v625_v0 }
  0x4e   :  { %453 = vmatpush3.msra.mxu1 %v168_v16  ;;  %482 = vmatpush3.msra.mxu0 %v265_v29 }
  0x4f   :  { %454 = vmatprep.subr.mxu1 %v625_v0  ;;  %483 = vmatprep.subr.mxu0 %v625_v0 }
  0x50   :  { %455 = vmatpush3.msra.mxu1 %v167_v17  ;;  %484 = vmatpush3.msra.mxu0 %v264_v30 }
  0x51   :  { %456 = vmatprep.subr.mxu1 %v625_v0  ;;  %485 = vmatprep.subr.mxu0 %v625_v0 }
  0x52   :  { %457 = vmatpush3.msra.mxu1 %v166_v18  ;;  %486 = vmatpush3.msra.mxu0 %v263_v31 }
  0x53   :  { %458 = vmatprep.subr.mxu1 %v625_v0  ;;  %487 = vmatprep.subr.mxu0 %v625_v0 }
  0x54   :  { %459 = vmatpush3.msra.mxu1 %v165_v19  ;;  %488 = vmatpush3.msra.mxu0 %v262_v32 }
  0x55   :  { %489 = vmatprep.subr.mxu0 %v625_v0 }
  0x56   :  { %490 = vmatpush3.msra.mxu0 %v261_v38 }
  0x57   :  { %491 = vmatprep.subr.mxu0 %v625_v0 }
  0x58   :  { %492 = vmatpush3.msra.mxu0 %v260_v39 }
  0x59   :  { %493 = vmatprep.subr.mxu0 %v625_v0 }
  0x5a   :  { %494 = vmatpush3.msra.mxu0 %v259_v40 }
  0xf9   :  { %v160_v34 = vpop.f32.mrf.mxu0 }
  0xfa   :  { %v161_v35 = vadd.f32 %v380_v33, %v160_v34 }
  0xfb   :  { %v427_v36 = vpop.f32.mrf.mxu0 }
  0xfc   :  { %v164_v37 = vmax.f32 %v161_v35, 0.0 }
  0xfe   :  { %461 = vmatmul.mubr.f32.vlgmr.msra.gmra.mxu1 %v164_v37 }
 0x1be   :  { %v254_v42 = vpop.f32.mrf.mxu1 }
 0x1bf   :  { %v255_v43 = vadd.f32 %v382_v41, %v254_v42 }
 0x1c0   :  { %v462_v44 = vpop.f32.mrf.mxu1 }
 0x1c1   :  { %v258_v45 = vmax.f32 %v255_v43, 0.0 }
 0x1c3   :  { %496 = vmatmul.mubr.f32.vlgmr.msra.gmra.mxu0 %v258_v45 }
 0x283   :  { %v348_v47 = vpop.f32.mrf.mxu0 }
 0x284   :  { %v349_v48 = vadd.f32 %v383_v46, %v348_v47 }
 0x285   :  { %v497_v49 = vpop.f32.mrf.mxu0 }
 0x286   :  { %352 = vmax.xlane.f32.xlu0 %v349_v48 }
 0x30f   :  { %v353_v50 = vpop.xlane.xlu0 %352 }
 0x310   :  { %v354_v51 = vsub.f32 %v349_v48, %v353_v50 }
 0x312   :  { %v355_v52 = vmul.f32 1.442695, %v354_v51 }
 0x314   :  { %507 = vpow2.f32 %v355_v52 }
 0x321   :  { %v508_v53 = vpop.eup %507 }
 0x322   :  { %357 = vadd.xlane.f32.xlu0 %v508_v53 }
 0x3ab   :  { %v358_v54 = vpop.xlane.xlu0 %357 }
 0x3ac   :  { %509 = vrcp.f32 %v358_v54 }
 0x3b9   :  { %v510_v55 = vpop.eup %509 }
 0x3ba   :  { %v360_v56 = vmul.f32 %v510_v55, %v508_v53 }
 0x3bc   :  { %362 = vst.msk [vmem:[#allocation10] sm:$0xff] %vm361_vm2, %v360_v56 }
 0x3bd   :  { %602 = shalt.err (!%p599_p10)
}
 0x3be   :  { %372 = dma.vmem_to_hbm [thread:$0]  %s370_s24, 128, %s748_s7, [#allocation4]  }
 0x3bf   :  { %617 = dma.done.wait [#allocation4], 128  }
 0x3c0   :  { %618 = vsyncadd [#allocation4], 4294967168 }
 0x3c1   :  { %376 = vsyncpa [#allocation3], 1 }
 0x3c2   :  { %377 = vsyncpa [#allocation6], 1 }
 0x3c3   :  { %378 = vsyncpa [#allocation9], 1 }
 0x3c4   :  { %379 = vsyncpa [#allocation4], 1 }

</bundles_post_ra>
